<compile_context>
chip_gen: v7x
topology: tpu7x:2x2x1
jax: 0.10.0
libtpu: 0.0.40
codegen_flags: <defaults>
</compile_context>

<pallas_src>
import numpy as np
import jax
import jax.numpy as jnp
from jax.experimental import pallas as pl
from jax.experimental.pallas import tpu as pltpu


# ---------------------------------------------------------------------------
# Raw parameters (shapes follow resnet20(output_dim=4); deterministic init).
# ---------------------------------------------------------------------------
def _conv_w(key, kh, kw, cin, cout):
    fan_in = kh * kw * cin
    return jax.random.normal(key, (kh, kw, cin, cout), jnp.float32) * jnp.sqrt(2.0 / fan_in)


def _bn(key, c):
    k1, k2, k3, k4 = jax.random.split(key, 4)
    gamma = 1.0 + 0.1 * jax.random.normal(k1, (c,), jnp.float32)
    beta = 0.1 * jax.random.normal(k2, (c,), jnp.float32)
    mean = 0.1 * jax.random.normal(k3, (c,), jnp.float32)
    var = 1.0 + 0.1 * jax.random.uniform(k4, (c,), jnp.float32)
    eps = 1e-5
    scale = gamma / jnp.sqrt(var + eps)          # eval-mode BatchNorm folded to scale/shift
    shift = beta - mean * scale
    return scale, shift


def init_raw_params(key):
    keys = iter(jax.random.split(key, 128))
    params = {
        "conv1_w": _conv_w(next(keys), 3, 3, 3, 16),
        "bn1": _bn(next(keys), 16),
        "fc_w": 0.1 * jax.random.normal(next(keys), (64, 4), jnp.float32),
        "fc_b": 0.1 * jax.random.normal(next(keys), (4,), jnp.float32),
    }
    in_planes = 16
    for stage, planes in (("layer1", 16), ("layer2", 32), ("layer3", 64)):
        blocks = []
        for b in range(3):
            blocks.append({
                "w1": _conv_w(next(keys), 3, 3, in_planes if b == 0 else planes, planes),
                "bn1": _bn(next(keys), planes),
                "w2": _conv_w(next(keys), 3, 3, planes, planes),
                "bn2": _bn(next(keys), planes),
            })
            if b == 0:
                in_planes = planes
        params[stage] = blocks
    return params


# ---------------------------------------------------------------------------
# Init-time conversion of the ResNet into K-fused banded-matmul operators.
# Activation layout (batch-tiled): 2-D (Bt*H, W*C), index [b*H + h, w*C + c].
# ---------------------------------------------------------------------------
def _conv_stack(w_hwio, bn, Wi, stride, k_pad=None):
    """3x3 conv (pad=1) + folded BN -> K-stacked weight (3*K, Wo*Co) + shift row (1, Wo*Co).

    Row block `di` (vertical tap) multiplies the activation rows shifted by (di-1); the
    horizontal taps / stride / zero padding are baked into the block-banded columns."""
    w = np.asarray(w_hwio, np.float32)          # (3, 3, Ci, Co)
    scale = np.asarray(bn[0], np.float32)
    shift = np.asarray(bn[1], np.float32)
    _, _, Ci, Co = w.shape
    Wo = (Wi - 1) // stride + 1
    K = Wi * Ci if k_pad is None else k_pad
    ws = w * scale[None, None, None, :]         # fold BN scale into the weights
    wb = np.zeros((3, K, Wo * Co), np.float32)
    for di in range(3):
        for wo in range(Wo):
            for dj in range(3):
                wi = stride * wo + dj - 1
                if 0 <= wi < Wi:
                    wb[di, wi * Ci:(wi + 1) * Ci, wo * Co:(wo + 1) * Co] = ws[di, dj]
    return wb.reshape(3 * K, Wo * Co), np.tile(shift, Wo)[None, :]


def _shortcut_cols(Wi, Ci, Co):
    """Option-A shortcut column map (::2 column subsample + zero channel padding)."""
    Wo = Wi // 2
    lo = (Co - Ci) // 2
    c = np.zeros((Wi * Ci, Wo * Co), np.float32)
    for wo in range(Wo):
        for ci in range(Ci):
            c[(2 * wo) * Ci + ci, wo * Co + lo + ci] = 1.0
    return c


def build_operator_params(raw, H, W, lane_pad=128):
    # TODO(synk): requires even spatial dims at every stage (true for 16x16 / 32x32 inputs).
    assert H % 4 == 0 and W % 4 == 0
    w_stem, c_stem = _conv_stack(raw["conv1_w"], raw["bn1"], W, stride=1, k_pad=lane_pad)

    res_w, res_c, sc_w, strides = [], [], [], []
    in_planes, Hc, Wc = 16, H, W
    for stage, planes, s0 in (("layer1", 16, 1), ("layer2", 32, 2), ("layer3", 64, 2)):
        for b in range(3):
            s = s0 if b == 0 else 1
            braw = raw[stage][b]
            w1, c1 = _conv_stack(braw["w1"], braw["bn1"], Wc, stride=s)
            Ho, Wo = (Hc - 1) // s + 1, (Wc - 1) // s + 1
            w2, c2 = _conv_stack(braw["w2"], braw["bn2"], Wo, stride=1)
            res_w += [w1, w2]
            res_c += [c1, c2]
            strides.append(s)
            if s != 1 or in_planes != planes:
                sc_w.append(_shortcut_cols(Wc, in_planes, planes))
            Hc, Wc, in_planes = Ho, Wo, planes

    # Head: the column half of the global average pool and the 1/(Hc*Wc) factor are folded
    # into the FC weight; the output is padded to 256 lanes (lane-dense kernel store).
    C3, NOUT = 64, 256
    fc_w = np.asarray(raw["fc_w"], np.float32)               # (64, 4)
    fcw = np.zeros((Wc * C3, NOUT), np.float32)
    for wq in range(Wc):
        fcw[wq * C3:(wq + 1) * C3, :fc_w.shape[1]] = fc_w / float(Hc * Wc)
    fcb = np.zeros((1, NOUT), np.float32)
    fcb[0, :fc_w.shape[1]] = np.asarray(raw["fc_b"], np.float32)

    shifts = np.stack([c_stem] + res_c + [fcb], axis=0)       # (20, 1, 256)
    return {
        "w_stem": jnp.asarray(w_stem, jnp.bfloat16),          # (384, 256)
        "w_res": jnp.asarray(np.stack(res_w, 0), jnp.bfloat16),   # (18, 768, 256)
        "w_sc": jnp.asarray(np.stack(sc_w, 0), jnp.bfloat16),     # (2, 256, 256)
        "shifts": jnp.asarray(shifts, jnp.float32),           # (20, 1, 256)
        "fcw": jnp.asarray(fcw, jnp.float32),                 # (256, 256)
        "strides": tuple(strides),
        "H": H, "W": W, "cin": 3, "lane_pad": lane_pad,
    }


# ---------------------------------------------------------------------------
# In-kernel building blocks (trace-time Python; all intermediates stay in VMEM).
# ---------------------------------------------------------------------------
def _relu(v):
    return jnp.maximum(v, 0.0)


def _shift_rows(x, direction, h_img, roll_sign):
    """Per-image vertical shift: result[r] = x[r - direction] within each H-row image,
    zero where the tap falls outside the image (also kills cross-image wrap of the roll)."""
    m = x.shape[0]
    rolled = pltpu.roll(x, (roll_sign * direction) % m, 0)    # XLU sublane rotate
    r = jax.lax.broadcasted_iota(jnp.int32, (m, 1), 0)
    if direction > 0:
        keep = (r % h_img) != 0
    else:
        keep = (r % h_img) != (h_img - 1)
    return rolled * keep.astype(x.dtype)


def _conv_s1(x, w_stack, shift_row, h_img, roll_sign):
    """Stride-1 3x3 conv + BN: rolls for the vertical taps, single K-fused bf16 MXU matmul."""
    up = _shift_rows(x, +1, h_img, roll_sign)                 # tap di=0: row h-1
    dn = _shift_rows(x, -1, h_img, roll_sign)                 # tap di=2: row h+1
    cat = jnp.concatenate([up, x, dn], axis=-1).astype(jnp.bfloat16)
    return jnp.dot(cat, w_stack, preferred_element_type=jnp.float32) + shift_row


def _even_odd_rows(x):
    """Row subsample via tiny iota-built selectors (stacked images -> targets are 2p / 2p+1)."""
    m_in = x.shape[0]
    m_out = m_in // 2
    p = jax.lax.broadcasted_iota(jnp.int32, (m_out, m_in), 0)
    q = jax.lax.broadcasted_iota(jnp.int32, (m_out, m_in), 1)
    xb = x.astype(jnp.bfloat16)
    even = jnp.dot((q == 2 * p).astype(jnp.bfloat16), xb, preferred_element_type=jnp.float32)
    odd = jnp.dot((q == 2 * p + 1).astype(jnp.bfloat16), xb, preferred_element_type=jnp.float32)
    return even, odd


def _conv_s2(x, w_stack, shift_row, h_out, roll_sign):
    """Stride-2 3x3 conv + BN: subsample rows first (half M), then one K-fused matmul."""
    even, odd = _even_odd_rows(x)                             # rows 2h / 2h+1
    top = _shift_rows(odd, +1, h_out, roll_sign)              # row 2h-1
    cat = jnp.concatenate([top, even, odd], axis=-1).astype(jnp.bfloat16)
    y = jnp.dot(cat, w_stack, preferred_element_type=jnp.float32) + shift_row
    return y, even                                            # `even` reused by the shortcut


def _probe_roll_sign():
    """Tiny one-off kernel that pins down pltpu.roll's rotate direction so the boundary
    masks always match (guards against the sublane-rotate sign convention)."""
    def kernel(x_ref, o_ref):
        o_ref[...] = pltpu.roll(x_ref[...], 1, 0)

    x = jnp.broadcast_to(jnp.arange(8, dtype=jnp.float32)[:, None], (8, 128))
    y = pl.pallas_call(kernel, out_shape=jax.ShapeDtypeStruct((8, 128), jnp.float32))(x)
    return 1 if float(y[0, 0]) > 3.0 else -1                  # 7.0 -> np.roll convention


def _pick_batch_tile(b, cap=16):
    """Largest divisor of B (<= cap) whose output block keeps (8,128)-friendly sublanes."""
    for d in range(min(b, cap), 0, -1):
        if b % d == 0 and (d == b or d % 8 == 0):
            return d
    return b


def _quat_to_rotmat(quat):
    q = quat * jax.lax.rsqrt(jnp.sum(quat * quat, axis=-1, keepdims=True) + 1e-12)
    w_, x_, y_, z_ = q[:, 0], q[:, 1], q[:, 2], q[:, 3]
    return jnp.stack([
        jnp.stack([1 - 2 * (y_ * y_ + z_ * z_), 2 * (x_ * y_ - w_ * z_), 2 * (x_ * z_ + w_ * y_)], -1),
        jnp.stack([2 * (x_ * y_ + w_ * z_), 1 - 2 * (x_ * x_ + z_ * z_), 2 * (y_ * z_ - w_ * x_)], -1),
        jnp.stack([2 * (x_ * z_ - w_ * y_), 2 * (y_ * z_ + w_ * x_), 1 - 2 * (x_ * x_ + y_ * y_)], -1),
    ], axis=-2)


# ---------------------------------------------------------------------------
# The fused Pallas forward pass.
# ---------------------------------------------------------------------------
def make_forward(ops):
    w_stem, w_res, w_sc = ops["w_stem"], ops["w_res"], ops["w_sc"]
    shifts, fcw = ops["shifts"], ops["fcw"]
    strides, H, W = ops["strides"], ops["H"], ops["W"]
    cin, lane_pad = ops["cin"], ops["lane_pad"]
    NOUT = fcw.shape[1]
    roll_sign = _probe_roll_sign()

    def kernel(x_ref, ws_ref, wr_ref, wsc_ref, sh_ref, fcw_ref, o_ref):
        bt = x_ref.shape[0] // H                              # images per grid step
        h_img = H

        # stem: conv3x3(3->16, lane-padded to 128) + BN + ReLU
        h = _relu(_conv_s1(x_ref[...], ws_ref[...], sh_ref[0], h_img, roll_sign))

        # 9 residual blocks (statically unrolled; activations stay as VMEM values)
        sc_i = 0
        for bi, s in enumerate(strides):
            if s == 2:                                        # stride-2 block, option-A shortcut
                h_out = h_img // 2
                y1, even = _conv_s2(h, wr_ref[2 * bi], sh_ref[1 + 2 * bi], h_out, roll_sign)
                h1 = _relu(y1)
                sc = jnp.dot(even.astype(jnp.bfloat16), wsc_ref[sc_i],
                             preferred_element_type=jnp.float32)
                sc_i += 1
                h_img = h_out
            else:                                             # identity block
                h1 = _relu(_conv_s1(h, wr_ref[2 * bi], sh_ref[1 + 2 * bi], h_img, roll_sign))
                sc = h
            h = _relu(_conv_s1(h1, wr_ref[2 * bi + 1], sh_ref[2 + 2 * bi], h_img, roll_sign) + sc)

        # per-image global average pool over rows (column half + 1/(H3*W3) folded into fcw)
        m3 = h.shape[0]
        b_i = jax.lax.broadcasted_iota(jnp.int32, (bt, m3), 0)
        r_i = jax.lax.broadcasted_iota(jnp.int32, (bt, m3), 1)
        pool = ((r_i // h_img) == b_i).astype(jnp.float32)
        pooled = jnp.dot(pool, h, preferred_element_type=jnp.float32)       # (Bt, 256) f32
        o_ref[...] = (jnp.dot(pooled, fcw_ref[...], preferred_element_type=jnp.float32)
                      + sh_ref[1 + 2 * len(strides)])          # FC bias row (lane-padded)

    def _const(nd):
        return lambda i: (0,) * nd

    @jax.jit
    def forward(TI):
        B, C, Hh, Ww = TI.shape
        assert (C, Hh, Ww) == (cin, H, W), "operators were built for a different input shape"

        # XLA glue: NCHW -> batch-stacked (B*H, 128) layout, lanes [w*C + c] zero-padded.
        x = jnp.transpose(TI, (0, 2, 3, 1)).reshape(B, Hh, Ww * C).astype(jnp.float32)
        x = jnp.pad(x, ((0, 0), (0, 0), (0, lane_pad - Ww * C))).reshape(B * Hh, lane_pad)

        bt = _pick_batch_tile(B)                               # rows per matmul = bt * H
        quat_pad = pl.pallas_call(
            kernel,
            grid=(B // bt,),
            out_shape=jax.ShapeDtypeStruct((B, NOUT), jnp.float32),
            in_specs=[
                pl.BlockSpec((bt * Hh, lane_pad), lambda i: (i, 0)),
                pl.BlockSpec(w_stem.shape, _const(2)),         # constant index maps: fetched
                pl.BlockSpec(w_res.shape, _const(3)),          # once, VMEM resident
                pl.BlockSpec(w_sc.shape, _const(3)),
                pl.BlockSpec(shifts.shape, _const(3)),
                pl.BlockSpec(fcw.shape, _const(2)),
            ],
            out_specs=pl.BlockSpec((bt, NOUT), lambda i: (i, 0)),
            compiler_params=pltpu.CompilerParams(
                dimension_semantics=("parallel",),
                vmem_limit_bytes=32 * 1024 * 1024,             # ~17 MB used (weights 2x-buffered)
            ),
        )(x, w_stem, w_res, w_sc, shifts, fcw)

        # Epilogue in XLA: normalize + quaternion -> rotation matrix (trivial (B,4) work;
        # keeps the kernel's output store lane-dense per the perf review).
        return _quat_to_rotmat(quat_pad[:, :4])

    return forward


# ---------------------------------------------------------------------------
# Pure-JAX f32 reference (same network, standard conv) for a sanity comparison.
# ---------------------------------------------------------------------------
def reference_forward(raw, TI_nchw):
    x = jnp.transpose(TI_nchw, (0, 2, 3, 1)).astype(jnp.float32)   # NHWC

    def conv_bn_relu(inp, w, bn, stride, residual=None):
        y = jax.lax.conv_general_dilated(
            inp, w, window_strides=(stride, stride), padding=((1, 1), (1, 1)),
            dimension_numbers=("NHWC", "HWIO", "NHWC"))
        scale, shift = bn
        y = y * scale + shift
        if residual is not None:
            y = y + residual
        return jnp.maximum(y, 0.0)

    x = conv_bn_relu(x, raw["conv1_w"], raw["bn1"], 1)
    in_planes = 16
    for stage, planes, s0 in (("layer1", 16, 1), ("layer2", 32, 2), ("layer3", 64, 2)):
        for b in range(3):
            s = s0 if b == 0 else 1
            braw = raw[stage][b]
            h1 = conv_bn_relu(x, braw["w1"], braw["bn1"], s)
            if s != 1 or in_planes != planes:
                sc = x[:, ::2, ::2, :]
                lo = (planes - in_planes) // 2
                sc = jnp.pad(sc, ((0, 0), (0, 0), (0, 0), (lo, planes - in_planes - lo)))
            else:
                sc = x
            x = conv_bn_relu(h1, braw["w2"], braw["bn2"], 1, residual=sc)
            in_planes = planes
    pooled = x.mean(axis=(1, 2))
    quat = pooled @ raw["fc_w"] + raw["fc_b"]
    return _quat_to_rotmat(quat)


# ---------------------------------------------------------------------------
if __name__ == "__main__":
    key = jax.random.PRNGKey(0)
    k_param, k_img = jax.random.split(key)
    raw = init_raw_params(k_param)
    TI = jax.random.normal(k_img, (2, 3, 16, 16), jnp.float32)     # small NCHW texture images

    ops = build_operator_params(raw, H=16, W=16)
    forward = make_forward(ops)

    R = jax.block_until_ready(forward(TI))
    assert R.shape == (2, 3, 3)

    # outputs are valid rotation matrices (normalize/decode is done in f32)
    I = jnp.einsum("bij,bkj->bik", R, R)
    assert jnp.max(jnp.abs(I - jnp.eye(3)[None])) < 1e-4
    assert jnp.max(jnp.abs(jnp.linalg.det(R) - 1.0)) < 1e-4

    # sanity vs. a pure-JAX f32 reference of the same network (kernel uses bf16 MXU operands)
    # TODO(synk): 0.35 abs tolerance is loose (bf16 operands across ~20 layers amplified by
    #             quaternion normalization); a quat-level check with a tighter bound would
    #             catch regressions earlier.
    R_ref = reference_forward(raw, TI)
    assert jnp.max(jnp.abs(R - R_ref)) < 0.35

    print("KERNEL_OK")
</pallas_src>

<mosaic_0001>
module attributes {stable_mosaic.version = 11 : i64} {
  func.func @kernel(%arg0: memref<8x128xf32, #tpu.memory_space<vmem>>, %arg1: memref<8x128xf32, #tpu.memory_space<vmem>>) attributes {dimension_semantics = [], scalar_prefetch = 0 : i64, scratch_operands = 0 : i64, tpu.core_type = #tpu.core_type<tc>} {
    %c0 = arith.constant 0 : index
    %c0_0 = arith.constant 0 : index
    %0 = vector.load %arg0[%c0, %c0_0] : memref<8x128xf32, #tpu.memory_space<vmem>>, vector<8x128xf32>
    %c1_i32 = arith.constant 1 : i32
    %1 = tpu.dynamic_rotate %0 by %c1_i32 dim 0 : vector<8x128xf32>, i32 -> vector<8x128xf32>
    %c0_1 = arith.constant 0 : index
    %c0_2 = arith.constant 0 : index
    %2 = vector.load %arg1[%c0_1, %c0_2] : memref<8x128xf32, #tpu.memory_space<vmem>>, vector<8x128xf32>
    tpu.vector_store %arg1[%c0_1, %c0_2], %1 {strides = array<i32>} : memref<8x128xf32, #tpu.memory_space<vmem>>, vector<8x128xf32>,
    return
  }
}

</mosaic_0001>

<bundles_post_ra>
// kernel: tpu_custom_call.1
= control target key start
LH: loop header
LB: loop body
LE: loop exit
PB: predicated region body
PF: predicated region fallthrough
CT: control target
= control target key end

     0   :  { %6 = vsyncpa [#allocation3], 0  ;;  %s125_s0 = inlined_call_operand.hbm [shape: f32[8,128], index: 0, kind: input, shape index: {}]   ;;  %s126_s1 = inlined_call_operand.hbm [shape: f32[8,128], index: 1, kind: output, shape index: {}]  }
   0x1   :  { %7 = vsyncpa [#allocation4], 0  ;;  %s89_s6 = smov [#allocation2]   ;;  %s41_s10 = scalar_lea.hbm %s125_s0, 128 }
   0x2   :  { %s14_s7 = sshll.u32 %s89_s6, 4  ;;  %p42_p0 = scmp.ne.s32.totalorder %s125_s0, %s41_s10  ;;  %s15_s7 = int_to_ptr.vmem [resolvable:$true] %s14_s7 }
   0x3   :  { %p45_p1 = scmp.lt.u32.totalorder %s41_s10, %s125_s0 }
   0x5   :  { %p47_p2 = pnand %p45_p1, %p42_p0 }
   0x7   :  { %50 = shalt.err (!%p47_p2)
}
   0x8   :  { %s51_s15 = scalar_lea.vmem %s15_s7, 128  ;;  %p56_p4 = scmp.lt.s32.totalorder %s15_s7, %s15_s7 }
   0x9   :  { %p52_p3 = scmp.ne.s32.totalorder %s15_s7, %s51_s15  ;;  %p57_p5 = scmp.lt.s32.totalorder %s51_s15, %s51_s15 }
   0xb   :  { %p58_p6 = por %p57_p5, %p56_p4 }
   0xd   :  { %p59_p7 = pnand %p58_p6, %p52_p3 }
   0xf   :  { %62 = shalt.err (!%p59_p7)
}
  0x10   :  { %17 = dma.hbm_to_vmem [thread:$0]  %s125_s0, 128, %s15_s7, [#allocation3]  }
  0x11   :  { %85 = dma.done.wait [#allocation3], 128  }
  0x12   :  { %86 = vsyncadd [#allocation3], 4294967168  ;;  %s90_s18 = smov [#allocation5]   ;;  %v21_v0 = vld [vmem:[#allocation2] sm:$0xff] }
  0x13   :  { %s30_s19 = sshll.u32 %s90_s18, 4  ;;  %v22_v1 = vrot.slane %v21_v0, 7  ;;  %s31_s19 = int_to_ptr.vmem [resolvable:$true] %s30_s19 }
  0x14   :  { %s63_s20 = scalar_lea.vmem %s31_s19, 128  ;;  %p68_p9 = scmp.lt.s32.totalorder %s31_s19, %s31_s19 }
  0x15   :  { %23 = vst [vmem:[#allocation5] sm:$0xff] %v22_v1  ;;  %p64_p8 = scmp.ne.s32.totalorder %s31_s19, %s63_s20  ;;  %p69_p10 = scmp.lt.s32.totalorder %s63_s20, %s63_s20 }
  0x17   :  { %p70_p11 = por %p69_p10, %p68_p9 }
  0x19   :  { %p71_p12 = pnand %p70_p11, %p64_p8 }
  0x1b   :  { %74 = shalt.err (!%p71_p12)
}
  0x1c   :  { %s75_s23 = scalar_lea.hbm %s126_s1, 128 }
  0x1d   :  { %p76_p13 = scmp.ne.s32.totalorder %s126_s1, %s75_s23  ;;  %p79_p0 = scmp.lt.u32.totalorder %s75_s23, %s126_s1 }
  0x1f   :  { %p81_p1 = pnand %p79_p0, %p76_p13 }
  0x21   :  { %84 = shalt.err (!%p81_p1)
}
  0x22   :  { %33 = dma.vmem_to_hbm [thread:$0]  %s31_s19, 128, %s126_s1, [#allocation4]  }
  0x23   :  { %87 = dma.done.wait [#allocation4], 128  }
  0x24   :  { %88 = vsyncadd [#allocation4], 4294967168 }
  0x25   :  { %37 = vsyncpa [#allocation3], 1 }
  0x26   :  { %38 = vsyncpa [#allocation4], 1 }

</bundles_post_ra>
